<compile_context>
chip_gen: v7x
topology: tpu7x:2x2x1
jax: 0.10.0
libtpu: 0.0.40
codegen_flags: <defaults>
</compile_context>

<pallas_src>
import jax
import jax.numpy as jnp
from jax.experimental import pallas as pl
from jax.experimental.pallas import tpu as pltpu


HIDDEN = 128
OUT_PAD = 128   # lane-dense padded output width
IN_PAD = 32     # padded input-feature width


def _round_up(n, m):
    return ((n + m - 1) // m) * m


def mlp_kernel(x_ref, w1_ref, b1_ref, w2_ref, b2_ref, w3_ref, b3_ref,
               o_ref, h1_ref, h2_ref):
    # Layer 1: Linear + ReLU (MXU matmul in bf16, f32 accumulate, f32 epilogue)
    x = x_ref[...]
    h1_ref[...] = jnp.maximum(
        jnp.dot(x, w1_ref[...], preferred_element_type=jnp.float32) + b1_ref[...],
        0.0)
    # Layer 2: Linear + ReLU
    h1 = h1_ref[...].astype(jnp.bfloat16)
    h2_ref[...] = jnp.maximum(
        jnp.dot(h1, w2_ref[...], preferred_element_type=jnp.float32) + b2_ref[...],
        0.0)
    # Layer 3: Linear (output columns padded to 128 -> unmasked lane-dense store)
    h2 = h2_ref[...].astype(jnp.bfloat16)
    out = jnp.dot(h2, w3_ref[...], preferred_element_type=jnp.float32) + b3_ref[...]
    o_ref[...] = out.astype(o_ref.dtype)


def mlp_forward(x, params, *, tile_b=512):
    """x: [B, input_size] f32. params: dict of PyTorch-convention weights."""
    B, in_size = x.shape
    out_size = params["w3"].shape[0]

    # --- prep weights: transpose [out, in] -> [in, out], pad, cast to bf16 ---
    w1 = params["w1"].T                                   # [25, 128]
    w1 = jnp.pad(w1, ((0, IN_PAD - in_size), (0, 0))).astype(jnp.bfloat16)
    w2 = params["w2"].T.astype(jnp.bfloat16)              # [128, 128]
    w3 = params["w3"].T                                   # [128, 6]
    w3 = jnp.pad(w3, ((0, 0), (0, OUT_PAD - out_size))).astype(jnp.bfloat16)

    b1 = params["b1"][None, :]                                           # [1,128] f32
    b2 = params["b2"][None, :]                                           # [1,128] f32
    b3 = jnp.pad(params["b3"], (0, OUT_PAD - out_size))[None, :]         # [1,128] f32

    # --- prep x: pad features 25 -> 32, pad batch to a multiple of tile_b ---
    if B <= tile_b:
        tb = max(8, _round_up(B, 8))       # single tile, sublane-aligned
    else:
        tb = tile_b
    B_pad = _round_up(B, tb)
    xp = jnp.pad(x, ((0, B_pad - B), (0, IN_PAD - in_size))).astype(jnp.bfloat16)

    grid = (B_pad // tb,)
    resident = lambda shape: pl.BlockSpec(shape, lambda i: (0, 0))

    out_padded = pl.pallas_call(
        mlp_kernel,
        out_shape=jax.ShapeDtypeStruct((B_pad, OUT_PAD), jnp.float32),
        grid=grid,
        in_specs=[
            pl.BlockSpec((tb, IN_PAD), lambda i: (i, 0)),   # x streams
            resident((IN_PAD, HIDDEN)),                     # w1 (VMEM-resident)
            resident((1, HIDDEN)),                          # b1
            resident((HIDDEN, HIDDEN)),                     # w2
            resident((1, HIDDEN)),                          # b2
            resident((HIDDEN, OUT_PAD)),                    # w3 (padded)
            resident((1, OUT_PAD)),                         # b3 (padded)
        ],
        out_specs=pl.BlockSpec((tb, OUT_PAD), lambda i: (i, 0)),
        scratch_shapes=[
            pltpu.VMEM((tb, HIDDEN), jnp.float32),          # h1
            pltpu.VMEM((tb, HIDDEN), jnp.float32),          # h2
        ],
        compiler_params=pltpu.CompilerParams(
            dimension_semantics=("parallel",),
        ),
    )(xp, w1, b1, w2, b2, w3, b3)

    return out_padded[:B, :out_size]


def init_params(key, input_size=25, hidden_size=128, output_size=6):
    """Deterministic init mimicking nn.Linear's uniform(-1/sqrt(fan_in), +) scheme."""
    ks = jax.random.split(key, 6)

    def lin(kw, kb, fan_in, fan_out):
        bound = 1.0 / jnp.sqrt(fan_in)
        w = jax.random.uniform(kw, (fan_out, fan_in), jnp.float32, -bound, bound)
        b = jax.random.uniform(kb, (fan_out,), jnp.float32, -bound, bound)
        return w, b

    w1, b1 = lin(ks[0], ks[1], input_size, hidden_size)
    w2, b2 = lin(ks[2], ks[3], hidden_size, hidden_size)
    w3, b3 = lin(ks[4], ks[5], hidden_size, output_size)
    return {"w1": w1, "b1": b1, "w2": w2, "b2": b2, "w3": w3, "b3": b3}


def mlp_reference(x, p):
    h = jnp.maximum(x @ p["w1"].T + p["b1"], 0.0)
    h = jnp.maximum(h @ p["w2"].T + p["b2"], 0.0)
    return h @ p["w3"].T + p["b3"]


if __name__ == "__main__":
    key = jax.random.PRNGKey(0)
    k_x, k_p = jax.random.split(key)

    batch, input_size, hidden_size, output_size = 8, 25, 128, 6
    x = jax.random.normal(k_x, (batch, input_size), jnp.float32)
    params = init_params(k_p, input_size, hidden_size, output_size)

    out = mlp_forward(x, params)
    out = jax.block_until_ready(out)

    ref = mlp_reference(x, params)
    assert out.shape == (batch, output_size)
    # bf16 matmul inputs with f32 accumulation: ~1e-2 relative error expected.
    assert jnp.allclose(out, ref, atol=2e-2, rtol=2e-2), (
        f"max abs err {jnp.max(jnp.abs(out - ref))}")

    print("KERNEL_OK")
</pallas_src>

<mosaic_0001>
module attributes {stable_mosaic.version = 11 : i64} {
  func.func @mlp_kernel(%arg0: i32, %arg1: memref<8x32xbf16, #tpu.memory_space<vmem>>, %arg2: memref<32x128xbf16, #tpu.memory_space<vmem>>, %arg3: memref<1x128xf32, #tpu.memory_space<vmem>>, %arg4: memref<128x128xbf16, #tpu.memory_space<vmem>>, %arg5: memref<1x128xf32, #tpu.memory_space<vmem>>, %arg6: memref<128x128xbf16, #tpu.memory_space<vmem>>, %arg7: memref<1x128xf32, #tpu.memory_space<vmem>>, %arg8: memref<8x128xf32, #tpu.memory_space<vmem>>, %arg9: memref<8x128xf32, #tpu.memory_space<vmem>>, %arg10: memref<8x128xf32, #tpu.memory_space<vmem>>) attributes {dimension_semantics = [#tpu.dimension_semantics<parallel>], iteration_bounds = array<i64: 1>, scalar_prefetch = 0 : i64, scratch_operands = 2 : i64, tpu.core_type = #tpu.core_type<tc>, window_params = [{transform_indices = @transform_0, window_bounds = array<i64: 8, 32>}, {pipeline_mode = #tpu.pipeline_mode<synchronous>, transform_indices = @transform_1, window_bounds = array<i64: 32, 128>}, {pipeline_mode = #tpu.pipeline_mode<synchronous>, transform_indices = @transform_2, window_bounds = array<i64: 1, 128>}, {pipeline_mode = #tpu.pipeline_mode<synchronous>, transform_indices = @transform_3, window_bounds = array<i64: 128, 128>}, {pipeline_mode = #tpu.pipeline_mode<synchronous>, transform_indices = @transform_4, window_bounds = array<i64: 1, 128>}, {pipeline_mode = #tpu.pipeline_mode<synchronous>, transform_indices = @transform_5, window_bounds = array<i64: 128, 128>}, {pipeline_mode = #tpu.pipeline_mode<synchronous>, transform_indices = @transform_6, window_bounds = array<i64: 1, 128>}, {transform_indices = @transform_7, window_bounds = array<i64: 8, 128>}]} {
    %c0 = arith.constant 0 : index
    %c0_0 = arith.constant 0 : index
    %0 = vector.load %arg1[%c0, %c0_0] : memref<8x32xbf16, #tpu.memory_space<vmem>>, vector<8x32xbf16>
    %c0_1 = arith.constant 0 : index
    %c0_2 = arith.constant 0 : index
    %1 = vector.load %arg2[%c0_1, %c0_2] : memref<32x128xbf16, #tpu.memory_space<vmem>>, vector<32x128xbf16>
    %cst = arith.constant dense<0.000000e+00> : vector<8x128xf32>
    %2 = tpu.matmul %0, %1, %cst {dimension_numbers = #tpu.dot_dimension_numbers<[1], [0], [0], [1], [0, 0, 1, 1], [], []>} : vector<8x32xbf16>, vector<32x128xbf16>, vector<8x128xf32> -> vector<8x128xf32>
    %c0_3 = arith.constant 0 : index
    %c0_4 = arith.constant 0 : index
    %3 = vector.load %arg3[%c0_3, %c0_4] : memref<1x128xf32, #tpu.memory_space<vmem>>, vector<1x128xf32>
    %4 = vector.broadcast %3 : vector<1x128xf32> to vector<8x128xf32>
    %5 = arith.addf %2, %4 : vector<8x128xf32>
    %cst_5 = arith.constant 0.000000e+00 : f32
    %6 = vector.broadcast %cst_5 : f32 to vector<8x128xf32>
    %7 = arith.maximumf %5, %6 : vector<8x128xf32>
    %c0_6 = arith.constant 0 : index
    %c0_7 = arith.constant 0 : index
    %8 = vector.load %arg9[%c0_6, %c0_7] : memref<8x128xf32, #tpu.memory_space<vmem>>, vector<8x128xf32>
    tpu.vector_store %arg9[%c0_6, %c0_7], %7 {strides = array<i32>} : memref<8x128xf32, #tpu.memory_space<vmem>>, vector<8x128xf32>,
    %c0_8 = arith.constant 0 : index
    %c0_9 = arith.constant 0 : index
    %9 = vector.load %arg9[%c0_8, %c0_9] : memref<8x128xf32, #tpu.memory_space<vmem>>, vector<8x128xf32>
    %10 = arith.truncf %9 : vector<8x128xf32> to vector<8x128xbf16>
    %c0_10 = arith.constant 0 : index
    %c0_11 = arith.constant 0 : index
    %11 = vector.load %arg4[%c0_10, %c0_11] : memref<128x128xbf16, #tpu.memory_space<vmem>>, vector<128x128xbf16>
    %cst_12 = arith.constant dense<0.000000e+00> : vector<8x128xf32>
    %12 = tpu.matmul %10, %11, %cst_12 {dimension_numbers = #tpu.dot_dimension_numbers<[1], [0], [0], [1], [0, 0, 1, 1], [], []>} : vector<8x128xbf16>, vector<128x128xbf16>, vector<8x128xf32> -> vector<8x128xf32>
    %c0_13 = arith.constant 0 : index
    %c0_14 = arith.constant 0 : index
    %13 = vector.load %arg5[%c0_13, %c0_14] : memref<1x128xf32, #tpu.memory_space<vmem>>, vector<1x128xf32>
    %14 = vector.broadcast %13 : vector<1x128xf32> to vector<8x128xf32>
    %15 = arith.addf %12, %14 : vector<8x128xf32>
    %cst_15 = arith.constant 0.000000e+00 : f32
    %16 = vector.broadcast %cst_15 : f32 to vector<8x128xf32>
    %17 = arith.maximumf %15, %16 : vector<8x128xf32>
    %c0_16 = arith.constant 0 : index
    %c0_17 = arith.constant 0 : index
    %18 = vector.load %arg10[%c0_16, %c0_17] : memref<8x128xf32, #tpu.memory_space<vmem>>, vector<8x128xf32>
    tpu.vector_store %arg10[%c0_16, %c0_17], %17 {strides = array<i32>} : memref<8x128xf32, #tpu.memory_space<vmem>>, vector<8x128xf32>,
    %c0_18 = arith.constant 0 : index
    %c0_19 = arith.constant 0 : index
    %19 = vector.load %arg10[%c0_18, %c0_19] : memref<8x128xf32, #tpu.memory_space<vmem>>, vector<8x128xf32>
    %20 = arith.truncf %19 : vector<8x128xf32> to vector<8x128xbf16>
    %c0_20 = arith.constant 0 : index
    %c0_21 = arith.constant 0 : index
    %21 = vector.load %arg6[%c0_20, %c0_21] : memref<128x128xbf16, #tpu.memory_space<vmem>>, vector<128x128xbf16>
    %cst_22 = arith.constant dense<0.000000e+00> : vector<8x128xf32>
    %22 = tpu.matmul %20, %21, %cst_22 {dimension_numbers = #tpu.dot_dimension_numbers<[1], [0], [0], [1], [0, 0, 1, 1], [], []>} : vector<8x128xbf16>, vector<128x128xbf16>, vector<8x128xf32> -> vector<8x128xf32>
    %c0_23 = arith.constant 0 : index
    %c0_24 = arith.constant 0 : index
    %23 = vector.load %arg7[%c0_23, %c0_24] : memref<1x128xf32, #tpu.memory_space<vmem>>, vector<1x128xf32>
    %24 = vector.broadcast %23 : vector<1x128xf32> to vector<8x128xf32>
    %25 = arith.addf %22, %24 : vector<8x128xf32>
    %c0_25 = arith.constant 0 : index
    %c0_26 = arith.constant 0 : index
    %26 = vector.load %arg8[%c0_25, %c0_26] : memref<8x128xf32, #tpu.memory_space<vmem>>, vector<8x128xf32>
    tpu.vector_store %arg8[%c0_25, %c0_26], %25 {strides = array<i32>} : memref<8x128xf32, #tpu.memory_space<vmem>>, vector<8x128xf32>,
    return
  }
  func.func @transform_0(%arg0: i32) -> (i32, i32) {
    %c0_i32 = arith.constant 0 : i32
    %c0_i32_0 = arith.constant 0 : i32
    return %arg0, %c0_i32 : i32, i32
  }
  func.func @transform_1(%arg0: i32) -> (i32, i32) {
    %c0_i32 = arith.constant 0 : i32
    %c0_i32_0 = arith.constant 0 : i32
    %c0_i32_1 = arith.constant 0 : i32
    return %c0_i32, %c0_i32_0 : i32, i32
  }
  func.func @transform_2(%arg0: i32) -> (i32, i32) {
    %c0_i32 = arith.constant 0 : i32
    %c0_i32_0 = arith.constant 0 : i32
    %c0_i32_1 = arith.constant 0 : i32
    return %c0_i32, %c0_i32_0 : i32, i32
  }
  func.func @transform_3(%arg0: i32) -> (i32, i32) {
    %c0_i32 = arith.constant 0 : i32
    %c0_i32_0 = arith.constant 0 : i32
    %c0_i32_1 = arith.constant 0 : i32
    return %c0_i32, %c0_i32_0 : i32, i32
  }
  func.func @transform_4(%arg0: i32) -> (i32, i32) {
    %c0_i32 = arith.constant 0 : i32
    %c0_i32_0 = arith.constant 0 : i32
    %c0_i32_1 = arith.constant 0 : i32
    return %c0_i32, %c0_i32_0 : i32, i32
  }
  func.func @transform_5(%arg0: i32) -> (i32, i32) {
    %c0_i32 = arith.constant 0 : i32
    %c0_i32_0 = arith.constant 0 : i32
    %c0_i32_1 = arith.constant 0 : i32
    return %c0_i32, %c0_i32_0 : i32, i32
  }
  func.func @transform_6(%arg0: i32) -> (i32, i32) {
    %c0_i32 = arith.constant 0 : i32
    %c0_i32_0 = arith.constant 0 : i32
    %c0_i32_1 = arith.constant 0 : i32
    return %c0_i32, %c0_i32_0 : i32, i32
  }
  func.func @transform_7(%arg0: i32) -> (i32, i32) {
    %c0_i32 = arith.constant 0 : i32
    %c0_i32_0 = arith.constant 0 : i32
    return %arg0, %c0_i32 : i32, i32
  }
}

</mosaic_0001>

<bundles_post_ra>
// kernel: tpu_custom_call.1
= control target key start
LH: loop header
LB: loop body
LE: loop exit
PB: predicated region body
PF: predicated region fallthrough
CT: control target
= control target key end

     0   :  { %12 = vsyncpa [#allocation5], 0  ;;  %s784_s0 = inlined_call_operand.hbm [shape: bf16[8,32], index: 0, kind: input, shape index: {}]   ;;  %s785_s1 = inlined_call_operand.hbm [shape: bf16[32,128], index: 1, kind: input, shape index: {}]   ;;  %s786_s2 = inlined_call_operand.vmem [shape: f32[1,128], index: 2, kind: input, shape index: {}]   ;;  %s787_s3 = inlined_call_operand.hbm [shape: bf16[128,128], index: 3, kind: input, shape index: {}]   ;;  %s788_s4 = inlined_call_operand.vmem [shape: f32[1,128], index: 4, kind: input, shape index: {}]   ;;  %s789_s5 = inlined_call_operand.hbm [shape: bf16[128,128], index: 5, kind: input, shape index: {}]   ;;  %s790_s6 = inlined_call_operand.vmem [shape: f32[1,128], index: 6, kind: input, shape index: {}]   ;;  %s791_s7 = inlined_call_operand.hbm [shape: f32[8,128], index: 7, kind: output, shape index: {}]  }
   0x1   :  { %13 = vsyncpa [#allocation8], 0 }
   0x2   :  { %14 = vsyncpa [#allocation11], 0 }
   0x3   :  { %15 = vsyncpa [#allocation6], 0  ;;  %s633_s24 = smov [#allocation7]   ;;  %s515_s28 = scalar_lea.hbm %s785_s1, 256 }
   0x4   :  { %s31_s25 = sshll.u32 %s633_s24, 4  ;;  %p516_p0 = scmp.ne.s32.totalorder %s785_s1, %s515_s28  ;;  %s32_s25 = int_to_ptr.vmem [resolvable:$true] %s31_s25 }
   0x5   :  { %p519_p1 = scmp.lt.u32.totalorder %s515_s28, %s785_s1 }
   0x7   :  { %p521_p2 = pnand %p519_p1, %p516_p0 }
   0x9   :  { %524 = shalt.err (!%p521_p2)
}
   0xa   :  { %s525_s10 = scalar_lea.vmem %s32_s25, 256  ;;  %p530_p4 = scmp.lt.s32.totalorder %s32_s25, %s32_s25 }
   0xb   :  { %p526_p3 = scmp.ne.s32.totalorder %s32_s25, %s525_s10  ;;  %p531_p5 = scmp.lt.s32.totalorder %s525_s10, %s525_s10 }
   0xd   :  { %p532_p6 = por %p531_p5, %p530_p4 }
   0xf   :  { %p533_p7 = pnand %p532_p6, %p526_p3 }
  0x11   :  { %536 = shalt.err (!%p533_p7)
}
  0x12   :  { %s634_s11 = smov 64   ;;  %s635_s12 = smov 4  }
  0x13   :  { %37 = dma.hbm_to_vmem [thread:$0]  %s785_s1, 256, %s32_s25, [#allocation8], %s634_s11, %s634_s11, %s635_s12  }
  0x14   :  { %s636_s15 = smov [#allocation4]   ;;  %s637_s17 = smov [#allocation9]  }
  0x15   :  { %s22_s16 = sshll.u32 %s636_s15, 4  ;;  %s45_s18 = sshll.u32 %s637_s17, 4  ;;  %s23_s16 = int_to_ptr.vmem [resolvable:$true] %s22_s16  ;;  %s46_s18 = int_to_ptr.vmem [resolvable:$true] %s45_s18 }
  0x16   :  { %s537_s21 = scalar_lea.hbm %s784_s0, 64 }
  0x17   :  { %p538_p8 = scmp.ne.s32.totalorder %s784_s0, %s537_s21  ;;  %p541_p9 = scmp.lt.u32.totalorder %s537_s21, %s784_s0 }
  0x19   :  { %p543_p10 = pnand %p541_p9, %p538_p8 }
  0x1b   :  { %546 = shalt.err (!%p543_p10)
}
  0x1c   :  { %s547_s1 = scalar_lea.vmem %s23_s16, 64  ;;  %p552_p12 = scmp.lt.s32.totalorder %s23_s16, %s23_s16 }
  0x1d   :  { %p548_p11 = scmp.ne.s32.totalorder %s23_s16, %s547_s1  ;;  %p553_p13 = scmp.lt.s32.totalorder %s547_s1, %s547_s1 }
  0x1f   :  { %p554_p0 = por %p553_p13, %p552_p12 }
  0x21   :  { %p555_p1 = pnand %p554_p0, %p548_p11 }
  0x23   :  { %558 = shalt.err (!%p555_p1)
}
  0x24   :  { %25 = dma.hbm_to_vmem [thread:$0]  %s784_s0, 64, %s23_s16, [#allocation5]  }
  0x25   :  { %s559_s30 = scalar_lea.hbm %s787_s3, 1024 }
  0x26   :  { %p560_p2 = scmp.ne.s32.totalorder %s787_s3, %s559_s30  ;;  %p563_p3 = scmp.lt.u32.totalorder %s559_s30, %s787_s3 }
  0x28   :  { %p565_p4 = pnand %p563_p3, %p560_p2 }
  0x2a   :  { %568 = shalt.err (!%p565_p4)
}
  0x2b   :  { %s569_s14 = scalar_lea.vmem %s46_s18, 1024  ;;  %p574_p6 = scmp.lt.s32.totalorder %s46_s18, %s46_s18 }
  0x2c   :  { %p570_p5 = scmp.ne.s32.totalorder %s46_s18, %s569_s14  ;;  %p575_p7 = scmp.lt.s32.totalorder %s569_s14, %s569_s14 }
  0x2e   :  { %p576_p8 = por %p575_p7, %p574_p6 }
  0x30   :  { %p577_p9 = pnand %p576_p8, %p570_p5 }
  0x32   :  { %580 = shalt.err (!%p577_p9)
}
  0x33   :  { %51 = dma.hbm_to_vmem [thread:$0]  %s787_s3, 1024, %s46_s18, [#allocation8], %s634_s11, %s634_s11, %s635_s12  }
  0x34   :  { %s638_s16 = smov [#allocation10]   ;;  %s581_s21 = scalar_lea.hbm %s789_s5, 1024 }
  0x35   :  { %s59_s17 = sshll.u32 %s638_s16, 4  ;;  %p582_p10 = scmp.ne.s32.totalorder %s789_s5, %s581_s21  ;;  %s60_s17 = int_to_ptr.vmem [resolvable:$true] %s59_s17 }
  0x36   :  { %p585_p11 = scmp.lt.u32.totalorder %s581_s21, %s789_s5 }
  0x38   :  { %p587_p12 = pnand %p585_p11, %p582_p10 }
  0x3a   :  { %590 = shalt.err (!%p587_p12)
}
  0x3b   :  { %s591_s1 = scalar_lea.vmem %s60_s17, 1024  ;;  %p596_p0 = scmp.lt.s32.totalorder %s60_s17, %s60_s17 }
  0x3c   :  { %p592_p13 = scmp.ne.s32.totalorder %s60_s17, %s591_s1  ;;  %p597_p1 = scmp.lt.s32.totalorder %s591_s1, %s591_s1 }
  0x3e   :  { %p598_p2 = por %p597_p1, %p596_p0 }
  0x40   :  { %p599_p3 = pnand %p598_p2, %p592_p13 }
  0x42   :  { %602 = shalt.err (!%p599_p3)
}
  0x43   :  { %65 = dma.hbm_to_vmem [thread:$0]  %s789_s5, 1024, %s60_s17, [#allocation11], %s634_s11, %s634_s11, %s635_s12  }
  0x44   :  { %625 = dma.done.wait [#allocation5], 64  }
  0x45   :  { %626 = vsyncadd [#allocation5], 4294967232 }
  0x46   :  { %627 = dma.done.wait [#allocation8], 1280  }
  0x47   :  { %628 = vsyncadd [#allocation8], 4294966016 }
  0x48   :  { %629 = dma.done.wait [#allocation11], 1024  }
  0x49   :  { %630 = vsyncadd [#allocation11], 4294966272  ;;  %v639_v0 = vmov 0.0   ;;  %vm640_vm0 = vmmov 0   ;;  %v497_v1 = vld [vmem:[#allocation7] sm:$0xff]   ;;  %v498_v2 = vld [vmem:[#allocation7 + $0x8] sm:$0xff]  }
  0x4a   :  { %440 = vmatprep.subr.bf16.mxu0 %v639_v0  ;;  %444 = vmatprep.mubr.msk.bf16.mxu0 %vm640_vm0, %v639_v0  ;;  %v499_v3 = vld [vmem:[#allocation9] sm:$0xff]   ;;  %vm105_vm1 = vcmask 261120   ;;  %v500_v4 = vld [vmem:[#allocation9 + $0x8] sm:$0xff]   ;;  %v501_v6 = vld [vmem:[#allocation9 + $0x10] sm:$0xff]   ;;  %s641_s28 = smov [#allocation12]  }
  0x4b   :  { %448 = vmatprep.subr.bf16.mxu1 %v639_v0  ;;  %464 = vmatprep.mubr.msk.bf16.mxu1 %vm640_vm0, %v639_v0  ;;  %v81_v5 = vld [vmem:[#allocation4] sm:$0xf]  ;;  %v502_v7 = vld [vmem:[#allocation9 + $0x18] sm:$0xff]   ;;  %v503_v8 = vld [vmem:[#allocation9 + $0x20] sm:$0xff]   ;;  %s386_s29 = sshll.u32 %s641_s28, 4  ;;  %s387_s29 = int_to_ptr.vmem [resolvable:$true] %s386_s29 }
  0x4c   :  { %441 = vmatpush3.bf16.msra.mxu0 %v497_v1  ;;  %449 = vmatpush3.bf16.msra.mxu1 %v499_v3  ;;  %v504_v9 = vld [vmem:[#allocation9 + $0x28] sm:$0xff]   ;;  %v505_v10 = vld [vmem:[#allocation9 + $0x30] sm:$0xff]   ;;  %v506_v11 = vld [vmem:[#allocation9 + $0x38] sm:$0xff]   ;;  %p608_p5 = scmp.lt.s32.totalorder %s387_s29, %s387_s29 }
  0x4d   :  { %442 = vmatprep.subr.bf16.mxu0 %v639_v0  ;;  %450 = vmatprep.subr.bf16.mxu1 %v639_v0  ;;  %v507_v12 = vld [vmem:[#allocation10] sm:$0xff]   ;;  %v508_v13 = vld [vmem:[#allocation10 + $0x8] sm:$0xff]   ;;  %v509_v14 = vld [vmem:[#allocation10 + $0x10] sm:$0xff]  }
  0x4e   :  { %v510_v15 = vld [vmem:[#allocation10 + $0x18] sm:$0xff]   ;;  %v511_v16 = vld [vmem:[#allocation10 + $0x20] sm:$0xff]   ;;  %v512_v17 = vld [vmem:[#allocation10 + $0x28] sm:$0xff]  }
  0x4f   :  { %v397_v18 = vld [vmem:[%s786_s2] ss:$0 sm:$0xff]  ;;  %v513_v26 = vld [vmem:[#allocation10 + $0x30] sm:$0xff]   ;;  %v514_v27 = vld [vmem:[#allocation10 + $0x38] sm:$0xff]  }
  0x50   :  { %443 = vmatpush3.bf16.msra.mxu0 %v498_v2  ;;  %451 = vmatpush3.bf16.msra.mxu1 %v500_v4  ;;  %v401_v28 = vld [vmem:[%s788_s4] ss:$0 sm:$0xff]  ;;  %s603_s4 = scalar_lea.vmem %s387_s29, 128 }
  0x51   :  { %468 = vmatprep.subr.bf16.mxu0 %v639_v0  ;;  %452 = vmatprep.subr.bf16.mxu1 %v639_v0  ;;  %v410_v36 = vld [vmem:[%s790_s6] ss:$0 sm:$0xff]  ;;  %p604_p4 = scmp.ne.s32.totalorder %s387_s29, %s603_s4  ;;  %p609_p6 = scmp.lt.s32.totalorder %s603_s4, %s603_s4 }
  0x53   :  { %445 = vmatmul.mubr.msk.bf16.vlgmr.msra.gmra.mrb[0].mxu0 %vm105_vm1, %v81_v5  ;;  %p610_p7 = por %p609_p6, %p608_p5 }
  0x54   :  { %484 = vmatprep.mubr.msk.bf16.mxu0 %vm640_vm0, %v639_v0  ;;  %453 = vmatpush3.bf16.msra.mxu1 %v501_v6 }
  0x55   :  { %454 = vmatprep.subr.bf16.mxu1 %v639_v0  ;;  %469 = vmatpush3.bf16.msra.mxu0 %v507_v12  ;;  %p611_p8 = pnand %p610_p7, %p604_p4 }
  0x56   :  { %470 = vmatprep.subr.bf16.mxu0 %v639_v0 }
  0x58   :  { %455 = vmatpush3.bf16.msra.mxu1 %v502_v7 }
  0x59   :  { %456 = vmatprep.subr.bf16.mxu1 %v639_v0  ;;  %471 = vmatpush3.bf16.msra.mxu0 %v508_v13 }
  0x5a   :  { %472 = vmatprep.subr.bf16.mxu0 %v639_v0 }
  0x5c   :  { %457 = vmatpush3.bf16.msra.mxu1 %v503_v8 }
  0x5d   :  { %458 = vmatprep.subr.bf16.mxu1 %v639_v0  ;;  %473 = vmatpush3.bf16.msra.mxu0 %v509_v14 }
  0x5e   :  { %474 = vmatprep.subr.bf16.mxu0 %v639_v0 }
  0x60   :  { %459 = vmatpush3.bf16.msra.mxu1 %v504_v9 }
  0x61   :  { %460 = vmatprep.subr.bf16.mxu1 %v639_v0  ;;  %475 = vmatpush3.bf16.msra.mxu0 %v510_v15 }
  0x62   :  { %476 = vmatprep.subr.bf16.mxu0 %v639_v0 }
  0x64   :  { %461 = vmatpush3.bf16.msra.mxu1 %v505_v10 }
  0x65   :  { %462 = vmatprep.subr.bf16.mxu1 %v639_v0  ;;  %477 = vmatpush3.bf16.msra.mxu0 %v511_v16 }
  0x66   :  { %478 = vmatprep.subr.bf16.mxu0 %v639_v0 }
  0x68   :  { %463 = vmatpush3.bf16.msra.mxu1 %v506_v11 }
  0x69   :  { %479 = vmatpush3.bf16.msra.mxu0 %v512_v17 }
  0x6a   :  { %480 = vmatprep.subr.bf16.mxu0 %v639_v0 }
  0x6d   :  { %481 = vmatpush3.bf16.msra.mxu0 %v513_v26 }
  0x6e   :  { %482 = vmatprep.subr.bf16.mxu0 %v639_v0 }
  0x71   :  { %483 = vmatpush3.bf16.msra.mxu0 %v514_v27 }
 0x126   :  { %v143_v19 = vpop.f32.mrb[0].mxu0 }
 0x127   :  { %v144_v20 = vadd.f32 %v397_v18, %v143_v19  ;;  %v446_v21 = vpop.f32.mrb[1].mxu0 }
 0x128   :  { %v146_v22 = vpop.f32.mrb[2].mxu0 }
 0x129   :  { %v149_v23 = vmax.f32 %v144_v20, 0.0  ;;  %v447_v24 = vpop.f32.mrb[3].mxu0 }
 0x12b   :  { %v152_v25 = vpack.c.bf16 %v149_v23, %v149_v23 }
 0x12d   :  { %465 = vmatmul.mubr.bf16.vlgmr.msra.gmra.mrb[0].mxu1 %v152_v25 }
 0x200   :  { %v258_v29 = vpop.f32.mrb[0].mxu1 }
 0x201   :  { %v259_v30 = vadd.f32 %v401_v28, %v258_v29  ;;  %v466_v31 = vpop.f32.mrb[1].mxu1 }
 0x202   :  { %v261_v32 = vpop.f32.mrb[2].mxu1 }
 0x203   :  { %v264_v33 = vmax.f32 %v259_v30, 0.0  ;;  %v467_v34 = vpop.f32.mrb[3].mxu1 }
 0x205   :  { %v267_v35 = vpack.c.bf16 %v264_v33, %v264_v33 }
 0x207   :  { %485 = vmatmul.mubr.bf16.vlgmr.msra.gmra.mrb[4].mxu0 %v267_v35 }
 0x2da   :  { %v373_v37 = vpop.f32.mrb[4].mxu0 }
 0x2db   :  { %v374_v38 = vadd.f32 %v410_v36, %v373_v37  ;;  %v486_v39 = vpop.f32.mrb[5].mxu0 }
 0x2dc   :  { %v376_v40 = vpop.f32.mrb[6].mxu0 }
 0x2dd   :  { %379 = vst [vmem:[#allocation12] sm:$0xff] %v374_v38  ;;  %v487_v41 = vpop.f32.mrb[7].mxu0 }
 0x2de   :  { %614 = shalt.err (!%p611_p8)
}
 0x2df   :  { %s615_s6 = scalar_lea.hbm %s791_s7, 128 }
 0x2e0   :  { %p616_p9 = scmp.ne.s32.totalorder %s791_s7, %s615_s6  ;;  %p619_p10 = scmp.lt.u32.totalorder %s615_s6, %s791_s7 }
 0x2e2   :  { %p621_p11 = pnand %p619_p10, %p616_p9 }
 0x2e4   :  { %624 = shalt.err (!%p621_p11)
}
 0x2e5   :  { %389 = dma.vmem_to_hbm [thread:$0]  %s387_s29, 128, %s791_s7, [#allocation6]  }
 0x2e6   :  { %631 = dma.done.wait [#allocation6], 128  }
 0x2e7   :  { %632 = vsyncadd [#allocation6], 4294967168 }
 0x2e8   :  { %393 = vsyncpa [#allocation5], 1 }
 0x2e9   :  { %394 = vsyncpa [#allocation8], 1 }
 0x2ea   :  { %395 = vsyncpa [#allocation11], 1 }
 0x2eb   :  { %396 = vsyncpa [#allocation6], 1 }

</bundles_post_ra>
